<compile_context>
chip_gen: v5e
topology: v5e:2x2
jax: 0.10.0
libtpu: 0.0.40
codegen_flags: <defaults>
</compile_context>

<pallas_src>
import jax
import jax.numpy as jnp
from jax.experimental import pallas as pl
from jax.experimental.pallas import tpu as pltpu


# -----------------------------------------------------------------------------
# Kernel: two lane-dense MXU matmuls, weights resident across the batch grid.
# -----------------------------------------------------------------------------
def dqn_kernel(x_ref, w123_ref, b123_ref, wo_ref, bo_ref, out_ref):
    # x_ref:    (TB, S*F)   bf16
    # w123_ref: (S*F, H)    bf16   (fc1*fc2*fc3 folded)
    # b123_ref: (1, H)      f32
    # wo_ref:   (H, NP)     bf16   (out-layer weight, zero-padded to lane width)
    # bo_ref:   (1, NP)     f32
    # out_ref:  (TB, NP)    f32
    h3 = jnp.dot(x_ref[...], w123_ref[...],
                 preferred_element_type=jnp.float32) + b123_ref[...]
    h3 = jnp.maximum(h3, 0.0).astype(jnp.bfloat16)
    out_ref[...] = jnp.dot(h3, wo_ref[...],
                           preferred_element_type=jnp.float32) + bo_ref[...]


# -----------------------------------------------------------------------------
# Wrapper
# -----------------------------------------------------------------------------
def dqn_forward(x, params, *, tb=8):
    """x: (B, S, F) float32. params: folded/packed weights from make_params."""
    B, S, F = x.shape
    w123 = params["w123"]          # (S*F, H) bf16
    b123 = params["b123"]          # (1, H)   f32
    wo_pad = params["wo_pad"]      # (H, NP)  bf16
    bo_pad = params["bo_pad"]      # (1, NP)  f32
    A = params["action_num"]
    K = S * F
    H = w123.shape[1]
    NP = wo_pad.shape[1]

    # Flatten the (S,F) axes and cast activations to bf16 (halves x DMA bytes).
    x2 = x.reshape(B, K).astype(jnp.bfloat16)

    # Pad batch to a multiple of the batch tile so the grid is exact.
    Bp = pl.cdiv(B, tb) * tb
    if Bp != B:
        x2 = jnp.pad(x2, ((0, Bp - B), (0, 0)))

    out = pl.pallas_call(
        dqn_kernel,
        out_shape=jax.ShapeDtypeStruct((Bp, NP), jnp.float32),
        grid_spec=pltpu.PrefetchScalarGridSpec(
            num_scalar_prefetch=0,
            grid=(Bp // tb,),
            in_specs=[
                pl.BlockSpec((tb, K), lambda i: (i, 0)),     # x block per step
                pl.BlockSpec((K, H), lambda i: (0, 0)),      # weights stay resident
                pl.BlockSpec((1, H), lambda i: (0, 0)),
                pl.BlockSpec((H, NP), lambda i: (0, 0)),
                pl.BlockSpec((1, NP), lambda i: (0, 0)),
            ],
            out_specs=pl.BlockSpec((tb, NP), lambda i: (i, 0)),
        ),
        compiler_params=pltpu.CompilerParams(
            dimension_semantics=("parallel",),   # shards batch across TCs on v7x
        ),
    )(x2, w123, b123, wo_pad, bo_pad)

    return out[:B, :A]


# -----------------------------------------------------------------------------
# Parameter construction + host-side algebraic folding
# -----------------------------------------------------------------------------
def make_params(key, sample_num, feature_num, hidden=512, action_num=2):
    ks = jax.random.split(key, 8)
    # Same init style as the PyTorch module (out-layer init is deterministic too).
    w1 = 0.1 * jax.random.normal(ks[0], (1, feature_num), jnp.float32)   # fc1 (1,F)
    b1 = 0.01 * jax.random.normal(ks[1], (1, 1), jnp.float32)
    w2 = 0.1 * jax.random.normal(ks[2], (hidden, sample_num), jnp.float32)  # fc2
    b2 = 0.01 * jax.random.normal(ks[3], (1, hidden), jnp.float32)
    w3 = 0.1 * jax.random.normal(ks[4], (hidden, hidden), jnp.float32)      # fc3
    b3 = 0.01 * jax.random.normal(ks[5], (1, hidden), jnp.float32)
    wo = 0.1 * jax.random.normal(ks[6], (action_num, hidden), jnp.float32)  # out
    bo = 0.01 * jax.random.normal(ks[7], (1, action_num), jnp.float32)

    # ---- fold fc2 . fc3 (exact: no activation between them) ----
    w2_t, w3_t, wo_t = w2.T, w3.T, wo.T          # (S,H), (H,H), (H,A)
    W23 = w2_t @ w3_t                            # (S, H)
    b23 = b2 @ w3_t + b3                         # (1, H)

    # ---- fold fc1 in: h3_pre[b,:] = sum_{s,f} x[b,s,f]*w1[f]*W23[s,:] + b123 ----
    S, F, H = sample_num, feature_num, hidden
    W123 = (W23[:, None, :] * w1[0][None, :, None]).reshape(S * F, H)   # (S*F, H)
    b123 = b1[0, 0] * W23.sum(axis=0, keepdims=True) + b23              # (1, H)

    # ---- lane-dense (128-padded) output weight ----
    NP = ((action_num + 127) // 128) * 128
    wo_pad = jnp.zeros((H, NP), jnp.float32).at[:, :action_num].set(wo_t)
    bo_pad = jnp.zeros((1, NP), jnp.float32).at[:, :action_num].set(bo)

    return {
        # originals kept for the unfused f32 reference (and for training use)
        "w1": w1, "b1": b1, "w2": w2, "b2": b2, "w3": w3, "b3": b3,
        "wo": wo, "bo": bo,
        # folded / packed kernel params (weights in bf16, biases in f32)
        "w123": W123.astype(jnp.bfloat16),
        "b123": b123,
        "wo_pad": wo_pad.astype(jnp.bfloat16),
        "bo_pad": bo_pad,
        "action_num": action_num,
    }


# -----------------------------------------------------------------------------
# References
# -----------------------------------------------------------------------------
def dqn_reference_unfused_f32(x, p):
    """Direct transcription of the PyTorch forward, full f32."""
    h1 = jnp.einsum("bsf,f->bs", x, p["w1"][0]) + p["b1"][0, 0]
    h2 = h1 @ p["w2"].T + p["b2"]
    h3 = h2 @ p["w3"].T + p["b3"]
    h3 = jnp.maximum(h3, 0.0)
    return h3 @ p["wo"].T + p["bo"]


def dqn_reference_folded_bf16(x, p):
    """Same folded bf16 math as the kernel, via plain XLA (strict check)."""
    B = x.shape[0]
    x2 = x.reshape(B, -1).astype(jnp.bfloat16)
    h3 = jnp.dot(x2, p["w123"], preferred_element_type=jnp.float32) + p["b123"]
    h3 = jnp.maximum(h3, 0.0).astype(jnp.bfloat16)
    out = jnp.dot(h3, p["wo_pad"], preferred_element_type=jnp.float32) + p["bo_pad"]
    return out[:, : p["action_num"]]


# -----------------------------------------------------------------------------
if __name__ == "__main__":
    B, S, F, A = 16, 8, 32, 2   # batch, sample_num, feature_num, action_num
    key = jax.random.PRNGKey(0)
    kx, kp = jax.random.split(key)
    x = jax.random.normal(kx, (B, S, F), jnp.float32)
    params = make_params(kp, sample_num=S, feature_num=F, action_num=A)

    out = dqn_forward(x, params, tb=8)
    out = jax.block_until_ready(out)
    assert out.shape == (B, A), out.shape

    # Strict check: kernel matches the identically-folded bf16 XLA computation.
    ref_folded = dqn_reference_folded_bf16(x, params)
    assert jnp.allclose(out, ref_folded, atol=1e-3, rtol=1e-3), (out, ref_folded)

    # Sanity check: kernel matches the original unfused f32 forward
    # (tolerance accounts for bf16 weight quantization + reassociation).
    ref_f32 = dqn_reference_unfused_f32(x, params)
    assert jnp.allclose(out, ref_f32, atol=5e-2, rtol=5e-2), (out, ref_f32)

    print("KERNEL_OK")
</pallas_src>

<mosaic_0001>
module attributes {stable_mosaic.version = 11 : i64} {
  func.func @dqn_kernel(%arg0: i32, %arg1: memref<8x256xbf16, #tpu.memory_space<vmem>>, %arg2: memref<256x512xbf16, #tpu.memory_space<vmem>>, %arg3: memref<1x512xf32, #tpu.memory_space<vmem>>, %arg4: memref<512x128xbf16, #tpu.memory_space<vmem>>, %arg5: memref<1x128xf32, #tpu.memory_space<vmem>>, %arg6: memref<8x128xf32, #tpu.memory_space<vmem>>) attributes {dimension_semantics = [#tpu.dimension_semantics<parallel>], iteration_bounds = array<i64: 2>, scalar_prefetch = 0 : i64, scratch_operands = 0 : i64, tpu.core_type = #tpu.core_type<tc>, window_params = [{transform_indices = @transform_0, window_bounds = array<i64: 8, 256>}, {pipeline_mode = #tpu.pipeline_mode<synchronous>, transform_indices = @transform_1, window_bounds = array<i64: 256, 512>}, {pipeline_mode = #tpu.pipeline_mode<synchronous>, transform_indices = @transform_2, window_bounds = array<i64: 1, 512>}, {pipeline_mode = #tpu.pipeline_mode<synchronous>, transform_indices = @transform_3, window_bounds = array<i64: 512, 128>}, {pipeline_mode = #tpu.pipeline_mode<synchronous>, transform_indices = @transform_4, window_bounds = array<i64: 1, 128>}, {transform_indices = @transform_5, window_bounds = array<i64: 8, 128>}]} {
    %c0 = arith.constant 0 : index
    %c0_0 = arith.constant 0 : index
    %0 = vector.load %arg1[%c0, %c0_0] : memref<8x256xbf16, #tpu.memory_space<vmem>>, vector<8x256xbf16>
    %c0_1 = arith.constant 0 : index
    %c0_2 = arith.constant 0 : index
    %1 = vector.load %arg2[%c0_1, %c0_2] : memref<256x512xbf16, #tpu.memory_space<vmem>>, vector<256x512xbf16>
    %cst = arith.constant dense<0.000000e+00> : vector<8x512xf32>
    %2 = tpu.matmul %0, %1, %cst {dimension_numbers = #tpu.dot_dimension_numbers<[1], [0], [0], [1], [0, 0, 1, 1], [], []>} : vector<8x256xbf16>, vector<256x512xbf16>, vector<8x512xf32> -> vector<8x512xf32>
    %c0_3 = arith.constant 0 : index
    %c0_4 = arith.constant 0 : index
    %3 = vector.load %arg3[%c0_3, %c0_4] : memref<1x512xf32, #tpu.memory_space<vmem>>, vector<1x512xf32>
    %4 = vector.broadcast %3 : vector<1x512xf32> to vector<8x512xf32>
    %5 = arith.addf %2, %4 : vector<8x512xf32>
    %cst_5 = arith.constant 0.000000e+00 : f32
    %6 = vector.broadcast %cst_5 : f32 to vector<8x512xf32>
    %7 = arith.maximumf %5, %6 : vector<8x512xf32>
    %8 = arith.truncf %7 : vector<8x512xf32> to vector<8x512xbf16>
    %c0_6 = arith.constant 0 : index
    %c0_7 = arith.constant 0 : index
    %9 = vector.load %arg4[%c0_6, %c0_7] : memref<512x128xbf16, #tpu.memory_space<vmem>>, vector<512x128xbf16>
    %cst_8 = arith.constant dense<0.000000e+00> : vector<8x128xf32>
    %10 = tpu.matmul %8, %9, %cst_8 {dimension_numbers = #tpu.dot_dimension_numbers<[1], [0], [0], [1], [0, 0, 1, 1], [], []>} : vector<8x512xbf16>, vector<512x128xbf16>, vector<8x128xf32> -> vector<8x128xf32>
    %c0_9 = arith.constant 0 : index
    %c0_10 = arith.constant 0 : index
    %11 = vector.load %arg5[%c0_9, %c0_10] : memref<1x128xf32, #tpu.memory_space<vmem>>, vector<1x128xf32>
    %12 = vector.broadcast %11 : vector<1x128xf32> to vector<8x128xf32>
    %13 = arith.addf %10, %12 : vector<8x128xf32>
    %c0_11 = arith.constant 0 : index
    %c0_12 = arith.constant 0 : index
    %14 = vector.load %arg6[%c0_11, %c0_12] : memref<8x128xf32, #tpu.memory_space<vmem>>, vector<8x128xf32>
    tpu.vector_store %arg6[%c0_11, %c0_12], %13 {strides = array<i32>} : memref<8x128xf32, #tpu.memory_space<vmem>>, vector<8x128xf32>,
    return
  }
  func.func @transform_0(%arg0: i32) -> (i32, i32) {
    %c0_i32 = arith.constant 0 : i32
    %c0_i32_0 = arith.constant 0 : i32
    return %arg0, %c0_i32 : i32, i32
  }
  func.func @transform_1(%arg0: i32) -> (i32, i32) {
    %c0_i32 = arith.constant 0 : i32
    %c0_i32_0 = arith.constant 0 : i32
    %c0_i32_1 = arith.constant 0 : i32
    return %c0_i32, %c0_i32_0 : i32, i32
  }
  func.func @transform_2(%arg0: i32) -> (i32, i32) {
    %c0_i32 = arith.constant 0 : i32
    %c0_i32_0 = arith.constant 0 : i32
    %c0_i32_1 = arith.constant 0 : i32
    return %c0_i32, %c0_i32_0 : i32, i32
  }
  func.func @transform_3(%arg0: i32) -> (i32, i32) {
    %c0_i32 = arith.constant 0 : i32
    %c0_i32_0 = arith.constant 0 : i32
    %c0_i32_1 = arith.constant 0 : i32
    return %c0_i32, %c0_i32_0 : i32, i32
  }
  func.func @transform_4(%arg0: i32) -> (i32, i32) {
    %c0_i32 = arith.constant 0 : i32
    %c0_i32_0 = arith.constant 0 : i32
    %c0_i32_1 = arith.constant 0 : i32
    return %c0_i32, %c0_i32_0 : i32, i32
  }
  func.func @transform_5(%arg0: i32) -> (i32, i32) {
    %c0_i32 = arith.constant 0 : i32
    %c0_i32_0 = arith.constant 0 : i32
    return %arg0, %c0_i32 : i32, i32
  }
}

</mosaic_0001>

<bundles_post_ra>
// kernel: tpu_custom_call.1
= control target key start
LH: loop header
LB: loop body
LE: loop exit
PB: predicated region body
PF: predicated region fallthrough
CT: control target
= control target key end

     0   :  { %10 = vsyncpa [#allocation3], 0  ;;  %s2226_s0 = inlined_call_operand.hbm [shape: bf16[16,256], index: 0, kind: input, shape index: {}]   ;;  %s2227_s1 = inlined_call_operand.hbm [shape: bf16[256,512], index: 1, kind: input, shape index: {}]   ;;  %s2228_s2 = inlined_call_operand.hbm [shape: f32[1,512], index: 2, kind: input, shape index: {}]   ;;  %s2229_s3 = inlined_call_operand.hbm [shape: bf16[512,128], index: 3, kind: input, shape index: {}]   ;;  %s2230_s4 = inlined_call_operand.vmem [shape: f32[1,128], index: 4, kind: input, shape index: {}]   ;;  %s2231_s5 = inlined_call_operand.hbm [shape: f32[16,128], index: 5, kind: output, shape index: {}]  }
   0x1   :  { %12 = vsyncpa [#allocation3 + $0x1], 0 }
   0x2   :  { %13 = vsyncpa [#allocation6], 0 }
   0x3   :  { %14 = vsyncpa [#allocation9], 0 }
   0x4   :  { %15 = vsyncpa [#allocation4], 0 }
   0x5   :  { %17 = vsyncpa [#allocation4 + $0x1], 0  ;;  %s2048_s18 = smov 0   ;;  %s2050_s19 = smov 0  }
   0x6   :  { %s2052_s20 = smov 0   ;;  %s2054_s21 = smov 0  }
   0x7 LB: > { %s175_s24 = sshll.u32 %s2227_s1, 4  ;;  %s2072_s25 = sadd.s32 4294967295, %s2009_s21   ;;  %s2009_s21 = sphi %s2054_s21, %s2242_s21   ;;  %s2005_s20 = sphi %s2052_s20, %s2241_s20   ;;  %s2001_s19 = sphi %s2050_s19, %s2240_s19   ;;  %s1997_s18 = sphi %s2048_s18, %s2239_s18   ;;  %s176_s24 = int_to_ptr.hbm [resolvable:$true] %s175_s24 }
   0x8   : > { %p1234_p0 = scmp.ge.s32.totalorder %s2009_s21, 1  ;;  %p44_p1 = scmp.eq.s32.totalorder %s2072_s25, 0 }
   0x9   : > { %p164_p2 = scmp.lt.s32.totalorder %s2009_s21, 3  ;;  %s2011_s27 = smov [#allocation5]  }
   0xa   : > { %s177_s28 = sshll.u32 %s2011_s27, 4  ;;  %s190_s6 = sshll.u32 %s2228_s2, 4  ;;  %s178_s28 = int_to_ptr.vmem [resolvable:$true] %s177_s28  ;;  %s191_s6 = int_to_ptr.hbm [resolvable:$true] %s190_s6 }
   0xb   : > { %p2077_p3 = pnand %p1234_p0, %p164_p2  ;;  %s201_s10 = sshll.u32 %s2229_s3, 4  ;;  %s202_s10 = int_to_ptr.hbm [resolvable:$true] %s201_s10 }
   0xc   : > { %s2012_s11 = smov [#allocation7]   ;;  %s2013_s13 = smov 256  }
   0xd   : > { %p1749_p4 = pneg %p2077_p3  ;;  %s192_s12 = sshll.u32 %s2012_s11, 4  ;;  %s193_s12 = int_to_ptr.vmem [resolvable:$true] %s192_s12 }
   0xe   : > { %s2014_s14 = smov 16   ;;  %s2015_s15 = smov [#allocation8]  }
   0xf   : > { %p2089_p6 = pnand %p1749_p4, %p44_p1  ;;  %s203_s16 = sshll.u32 %s2015_s15, 4  ;;  %s204_s16 = int_to_ptr.vmem [resolvable:$true] %s203_s16 }
  0x10   : > { %s2016_s17 = smov 64   ;;  %s2017_s22 = smov 4  }
  0x11   : > { %1752 = dma.hbm_to_vmem [thread:$0]  (!%p2089_p6), %s176_s24, 8192, %s178_s28, [#allocation6], %s2013_s13, %s2013_s13, %s2014_s14  }
  0x12   : > { %1755 = dma.hbm_to_vmem [thread:$0]  (!%p2089_p6), %s191_s6, 64, %s193_s12, [#allocation6]  }
  0x13   : > { %1758 = dma.hbm_to_vmem [thread:$0]  (!%p2089_p6), %s202_s10, 4096, %s204_s16, [#allocation9], %s2016_s17, %s2016_s17, %s2017_s22  }
  0x14   : > { %s1233_s23 = sadd.s32 4294967294, %s2009_s21   ;;  %s2104_s24 = sadd.s32 1, %s2009_s21  }
  0x15   : > { %s30_s27 = sadd.s32 1, %s2005_s20  ;;  %s27_s28 = ssub.s32 %s2009_s21, %s2104_s24 }
  0x16   : > { %p37_p7 = scmp.ne.s32.totalorder %s2005_s20, %s2001_s19  ;;  %p28_p8 = scmp.eq.s32.totalorder %s27_s28, 0 }
  0x17   : > { %p38_p9 = scmp.eq.s32.totalorder %s2009_s21, 0  ;;  %p43_p10 = scmp.ne.s32.totalorder %s2001_s19, %s1997_s18 }
  0x18   : > { %p151_p11 = scmp.eq.s32.totalorder %s2072_s25, 1  ;;  %p157_p0 = scmp.eq.s32.totalorder %s1233_s23, 1 }
  0x19   : > { %s2116_s29 = scalar_select %p28_p8, %s2005_s20, %s30_s27  }
  0x1a   : > { %p2120_p12 = por %p44_p1, %p43_p10  ;;  %p2124_p13 = por %p151_p11, %p37_p7 }
  0x1b   : > { %p39_p2 = por %p38_p9, %p37_p7  ;;  %s220_s7 = sand.u32 1, %s2005_s20  }
  0x1c   : > { %p2129_p4 = por %p157_p0, %p43_p10  ;;  %p1770_p6 = scmp.lt.s32.totalorder %s2009_s21, 2 }
  0x1d   : > { %s1239_s9 = sshll.u32 %s220_s7, 3  ;;  %s1636_s10 = sshll.u32 %s2009_s21, 3 }
  0x1e   : > { %s229_s13 = scalar_lea.hbm %s2226_s0, %s1636_s10  ;;  %s224_s15 = scalar_lea.vmem [#allocation2], %s1239_s9 }
  0x1f   : > { %s231_s14 = sshll.u32 %s229_s13, 4  ;;  %s233_s16 = sshll.u32 %s224_s15, 4  ;;  %s232_s14 = int_to_ptr.hbm [resolvable:$true] %s231_s14  ;;  %s234_s16 = int_to_ptr.vmem [resolvable:$true] %s233_s16 }
  0x20   : > { %p2138_p8 = pnand %p1770_p6, %p39_p2  ;;  %s221_s22 = scalar_lea.sflag [#allocation3], %s220_s7 }
  0x21   : > { %s1905_s23 = sshra.s32 %s232_s14, 4  ;;  %s1912_s9 = scalar_lea.hbm %s2226_s0, 16  ;;  %s1906_s23 = int_to_ptr.hbm [resolvable:$true] %s1905_s23 }
  0x22   : > { %s1907_s27 = scalar_lea.hbm %s1906_s23, 8  ;;  %p1909_p9 = pneg %p2138_p8 }
  0x23   : > { %p1908_p7 = scmp.ne.s32.totalorder %s1906_s23, %s1907_s27  ;;  %p1913_p0 = scmp.lt.s32.totalorder %s1906_s23, %s2226_s0 }
  0x24   : > { %p1914_p2 = scmp.lt.s32.totalorder %s1912_s9, %s1907_s27 }
  0x25   : > { %p1910_p10 = pnand %p1909_p9, %p1908_p7 }
  0x26   : > { %p1915_p6 = por %p1914_p2, %p1913_p0 }
  0x27   : > { %p1911_p11 = pneg %p1910_p10 }
  0x29   : > { %p1916_p5 = pnand %p1915_p6, %p1911_p11 }
  0x2b   : > { %1919 = shalt.err (!%p1916_p5)
}
  0x2c   : > { %1762 = dma.hbm_to_vmem [thread:$0]  (!%p2138_p8), %s232_s14, 128, %s234_s16, %s221_s22  }
  0x2d   : > { %242 = sbr.rel (%p2077_p3) target bundleno = 403 (0x193), region = 40  ;;  %s2155_s7 = sand.u32 (!%p2077_p3), 1, %s2001_s19  }
  0x2e   : > { %s1243_s13 = sshll.u32 (!%p2077_p3), %s2155_s7, 3  ;;  %s245_s15 = scalar_lea.sflag (!%p2077_p3), [#allocation3], %s2155_s7 }
  0x2f   : > { %s2161_s23 = scalar_lea.vmem (!%p2077_p3), [#allocation2], %s1243_s13 }
  0x32   : > { %1980 = dma.done.wait (%p2120_p12), %s245_s15, 128  }
  0x33   : > { %1982 = vsyncadd (%p2120_p12), %s245_s15, 4294967168 }
  0x34   : > { %1984 = dma.done.wait (%p44_p1), [#allocation6], 8256  }
  0x35   : > { %1986 = vsyncadd (%p44_p1), [#allocation6], 4294959040 }
  0x36   : > { %1988 = dma.done.wait (%p44_p1), [#allocation9], 4096  }
  0x37   : > { %1990 = vsyncadd (%p44_p1), [#allocation9], 4294963200  ;;  %v1362_v0 = vld [vmem:[#allocation5 + $0xe0] sm:$0xf]  ;;  %v1667_v1 = vld [vmem:[#allocation5 + $0xec] sm:$0xf0] }
  0x38   : > { %v1490_v2 = vld [vmem:[#allocation5 + $0x1e0] sm:$0xf]  ;;  %v1363_v3 = vor.u32 %v1667_v1, %v1362_v0  ;;  %v1699_v4 = vld [vmem:[#allocation5 + $0x1ec] sm:$0xf0]  ;;  %v1665_v5 = vld [vmem:[#allocation5 + $0xe4] sm:$0xf] }
  0x39   : > { %v1364_v6 = vld [vmem:[#allocation5 + $0xf0] sm:$0xf0]  ;;  %v1491_v7 = vor.u32 %v1699_v4, %v1490_v2  ;;  %v1697_v9 = vld [vmem:[#allocation5 + $0x1e4] sm:$0xf]  ;;  %v1346_v11 = vld [vmem:[#allocation5 + $0xc0] sm:$0xf] }
  0x3a   : > { %v1367_v8 = vor.u32 %v1665_v5, %v1364_v6  ;;  %v1492_v10 = vld [vmem:[#allocation5 + $0x1f0] sm:$0xf0]  ;;  %693 = vmatpush.bf16.msra.mxu0 %v1363_v3  ;;  %v1663_v13 = vld [vmem:[#allocation5 + $0xcc] sm:$0xf0]  ;;  %v1474_v14 = vld [vmem:[#allocation5 + $0x1c0] sm:$0xf] }
  0x3b   : > { %v1495_v12 = vor.u32 %v1697_v9, %v1492_v10  ;;  %v1695_v15 = vld [vmem:[#allocation5 + $0x1cc] sm:$0xf0]  ;;  %706 = vmatpush.bf16.msra.mxu1 %v1491_v7  ;;  %v1347_v16 = vor.u32 %v1663_v13, %v1346_v11  ;;  %v1661_v18 = vld [vmem:[#allocation5 + $0xc4] sm:$0xf]  ;;  %v1348_v19 = vld [vmem:[#allocation5 + $0xd0] sm:$0xf0] }
  0x3c   : > { %719 = vmatpush.bf16.msra.mxu2 %v1367_v8  ;;  %v1475_v17 = vor.u32 %v1695_v15, %v1474_v14  ;;  %v1693_v20 = vld [vmem:[#allocation5 + $0x1c4] sm:$0xf]  ;;  %v1351_v21 = vor.u32 %v1661_v18, %v1348_v19  ;;  %v1476_v22 = vld [vmem:[#allocation5 + $0x1d0] sm:$0xf0]  ;;  %v1330_v23 = vld [vmem:[#allocation5 + $0xa0] sm:$0xf] }
  0x3d   : > { %732 = vmatpush.bf16.msra.mxu3 %v1495_v12  ;;  %v1659_v24 = vld [vmem:[#allocation5 + $0xac] sm:$0xf0]  ;;  %v1479_v25 = vor.u32 %v1693_v20, %v1476_v22  ;;  %v1458_v26 = vld [vmem:[#allocation5 + $0x1a0] sm:$0xf]  ;;  %v1657_v28 = vld [vmem:[#allocation5 + $0xa4] sm:$0xf] }
  0x3e   : > { %v1691_v27 = vld [vmem:[#allocation5 + $0x1ac] sm:$0xf0]  ;;  %694 = vmatpush.bf16.msra.mxu0 %v1347_v16  ;;  %v1331_v29 = vor.u32 %v1659_v24, %v1330_v23  ;;  %v1332_v30 = vld [vmem:[#allocation5 + $0xb0] sm:$0xf0]  ;;  %v1689_v31 = vld [vmem:[#allocation5 + $0x1a4] sm:$0xf] }
  0x3f   : > { %v1460_v32 = vld [vmem:[#allocation5 + $0x1b0] sm:$0xf0]  ;;  %707 = vmatpush.bf16.msra.mxu1 %v1475_v17  ;;  %v1459_v33 = vor.u32 %v1691_v27, %v1458_v26  ;;  %v1335_v34 = vor.u32 %v1657_v28, %v1332_v30  ;;  %v1314_v35 = vld [vmem:[#allocation5 + $0x80] sm:$0xf]  ;;  %v1655_v36 = vld [vmem:[#allocation5 + $0x8c] sm:$0xf0] }
  0x40   : > { %720 = vmatpush.bf16.msra.mxu2 %v1351_v21  ;;  %v1442_v37 = vld [vmem:[#allocation5 + $0x180] sm:$0xf]  ;;  %v1463_v38 = vor.u32 %v1689_v31, %v1460_v32  ;;  %v1687_v39 = vld [vmem:[#allocation5 + $0x18c] sm:$0xf0]  ;;  %v1653_v40 = vld [vmem:[#allocation5 + $0x84] sm:$0xf]  ;;  %v1315_v44 = vor.u32 %v1655_v36, %v1314_v35 }
  0x41   : > { %733 = vmatpush.bf16.msra.mxu3 %v1479_v25  ;;  %v1316_v41 = vld [vmem:[#allocation5 + $0x90] sm:$0xf0]  ;;  %v1685_v42 = vld [vmem:[#allocation5 + $0x184] sm:$0xf]  ;;  %v1443_v45 = vor.u32 %v1687_v39, %v1442_v37  ;;  %v1298_v47 = vld [vmem:[#allocation5 + $0x60] sm:$0xf] }
  0x42   : > { %v1444_v43 = vld [vmem:[#allocation5 + $0x190] sm:$0xf0]  ;;  %695 = vmatpush.bf16.msra.mxu0 %v1331_v29  ;;  %v1319_v46 = vor.u32 %v1653_v40, %v1316_v41  ;;  %v1651_v48 = vld [vmem:[#allocation5 + $0x6c] sm:$0xf0]  ;;  %v1426_v49 = vld [vmem:[#allocation5 + $0x160] sm:$0xf] }
  0x43   : > { %708 = vmatpush.bf16.msra.mxu1 %v1459_v33  ;;  %v1447_v50 = vor.u32 %v1685_v42, %v1444_v43  ;;  %v1683_v51 = vld [vmem:[#allocation5 + $0x16c] sm:$0xf0]  ;;  %v1649_v52 = vld [vmem:[#allocation5 + $0x64] sm:$0xf]  ;;  %v1300_v53 = vld [vmem:[#allocation5 + $0x70] sm:$0xf0]  ;;  %v1299_v56 = vor.u32 %v1651_v48, %v1298_v47 }
  0x44   : > { %721 = vmatpush.bf16.msra.mxu2 %v1335_v34  ;;  %v1681_v54 = vld [vmem:[#allocation5 + $0x164] sm:$0xf]  ;;  %v1428_v55 = vld [vmem:[#allocation5 + $0x170] sm:$0xf0]  ;;  %v1427_v57 = vor.u32 %v1683_v51, %v1426_v49  ;;  %v1303_v58 = vor.u32 %v1649_v52, %v1300_v53  ;;  %v1282_v59 = vld [vmem:[#allocation5 + $0x40] sm:$0xf] }
  0x45   : > { %734 = vmatpush.bf16.msra.mxu3 %v1463_v38  ;;  %v1647_v60 = vld [vmem:[#allocation5 + $0x4c] sm:$0xf0]  ;;  %v1410_v61 = vld [vmem:[#allocation5 + $0x140] sm:$0xf]  ;;  %v1431_v62 = vor.u32 %v1681_v54, %v1428_v55  ;;  %v1645_v0 = vld [vmem:[#allocation5 + $0x44] sm:$0xf] }
  0x46   : > { %696 = vmatpush.bf16.msra.mxu0 %v1315_v44  ;;  %v1679_v63 = vld [vmem:[#allocation5 + $0x14c] sm:$0xf0]  ;;  %v1284_v1 = vld [vmem:[#allocation5 + $0x50] sm:$0xf0]  ;;  %v1677_v2 = vld [vmem:[#allocation5 + $0x144] sm:$0xf]  ;;  %v1283_v4 = vor.u32 %v1647_v60, %v1282_v59 }
  0x47   : > { %709 = vmatpush.bf16.msra.mxu1 %v1443_v45  ;;  %v1412_v3 = vld [vmem:[#allocation5 + $0x150] sm:$0xf0]  ;;  %v1411_v5 = vor.u32 %v1679_v63, %v1410_v61  ;;  %v1287_v6 = vor.u32 %v1645_v0, %v1284_v1  ;;  %v1266_v7 = vld [vmem:[#allocation5 + $0x20] sm:$0xf]  ;;  %v1643_v8 = vld [vmem:[#allocation5 + $0x2c] sm:$0xf0] }
  0x48   : > { %722 = vmatpush.bf16.msra.mxu2 %v1319_v46  ;;  %v1394_v9 = vld [vmem:[#allocation5 + $0x120] sm:$0xf]  ;;  %v1415_v10 = vor.u32 %v1677_v2, %v1412_v3  ;;  %v1675_v11 = vld [vmem:[#allocation5 + $0x12c] sm:$0xf0]  ;;  %v1641_v12 = vld [vmem:[#allocation5 + $0x24] sm:$0xf]  ;;  %v1267_v16 = vor.u32 %v1643_v8, %v1266_v7 }
  0x49   : > { %735 = vmatpush.bf16.msra.mxu3 %v1447_v50  ;;  %v1268_v13 = vld [vmem:[#allocation5 + $0x30] sm:$0xf0]  ;;  %v1673_v14 = vld [vmem:[#allocation5 + $0x124] sm:$0xf]  ;;  %v1250_v17 = vld [vmem:[#allocation5] sm:$0xf]  ;;  %v1395_v20 = vor.u32 %v1675_v11, %v1394_v9 }
  0x4a   : > { %697 = vmatpush.bf16.msra.mxu0 %v1299_v56  ;;  %v1396_v15 = vld [vmem:[#allocation5 + $0x130] sm:$0xf0]  ;;  %v1639_v18 = vld [vmem:[#allocation5 + $0xc] sm:$0xf0]  ;;  %v1378_v19 = vld [vmem:[#allocation5 + $0x100] sm:$0xf]  ;;  %v1271_v21 = vor.u32 %v1641_v12, %v1268_v13 }
  0x4b   : > { %710 = vmatpush.bf16.msra.mxu1 %v1427_v57  ;;  %v1671_v22 = vld [vmem:[#allocation5 + $0x10c] sm:$0xf0]  ;;  %v1637_v23 = vld [vmem:[#allocation5 + $0x4] sm:$0xf]  ;;  %v1252_v24 = vld [vmem:[#allocation5 + $0x10] sm:$0xf0]  ;;  %v1399_v25 = vor.u32 %v1673_v14, %v1396_v15  ;;  %v1251_v32 = vor.u32 %v1639_v18, %v1250_v17 }
  0x4c   : > { %723 = vmatpush.bf16.msra.mxu2 %v1303_v58  ;;  %v1669_v26 = vld [vmem:[#allocation5 + $0x104] sm:$0xf]  ;;  %v1380_v27 = vld [vmem:[#allocation5 + $0x110] sm:$0xf0]  ;;  %v1370_v28 = vld [vmem:[#allocation5 + $0xe8] sm:$0xf]  ;;  %v1379_v37 = vor.u32 %v1671_v22, %v1378_v19  ;;  %v1255_v38 = vor.u32 %v1637_v23, %v1252_v24 }
  0x4d   : > { %736 = vmatpush.bf16.msra.mxu3 %v1431_v62  ;;  %v1668_v29 = vld [vmem:[#allocation5 + $0xf4] sm:$0xf0]  ;;  %v1498_v30 = vld [vmem:[#allocation5 + $0x1e8] sm:$0xf]  ;;  %v1666_v34 = vld [vmem:[#allocation5 + $0xec] sm:$0xf]  ;;  %v1383_v42 = vor.u32 %v1669_v26, %v1380_v27 }
  0x4e   : > { %698 = vmatpush.bf16.msra.mxu0 %v1283_v4  ;;  %v291_v31 = vld [vmem:[%s2161_s23] sm:$0xff]  ;;  %v1698_v39 = vld [vmem:[#allocation5 + $0x1ec] sm:$0xf]  ;;  %v1371_v43 = vor.u32 %v1668_v29, %v1370_v28  ;;  %v1354_v46 = vld [vmem:[#allocation5 + $0xc8] sm:$0xf]  ;;  %s1633_s14 = sshll.u32 %s2072_s25, 3 }
  0x4f   : > { %711 = vmatpush.bf16.msra.mxu1 %v1411_v5  ;;  %v1700_v33 = vld [vmem:[#allocation5 + $0x1f4] sm:$0xf0]  ;;  %v1372_v35 = vld [vmem:[#allocation5 + $0xf8] sm:$0xf0]  ;;  %v367_v36 = vunpack.c.l.b16 %v291_v31  ;;  %v368_v41 = vunpack.c.h.b16 %v291_v31  ;;  %v1482_v48 = vld [vmem:[#allocation5 + $0x1c8] sm:$0xf]  ;;  %s1129_s22 = scalar_lea.hbm %s2231_s5, %s1633_s14 }
  0x50   : > { %724 = vmatpush.bf16.msra.mxu2 %v1287_v6  ;;  %v1500_v40 = vld [vmem:[#allocation5 + $0x1f8] sm:$0xf0]  ;;  %v1499_v44 = vor.u32 %v1700_v33, %v1498_v30  ;;  %v1375_v45 = vor.u32 %v1666_v34, %v1372_v35  ;;  %v1664_v47 = vld [vmem:[#allocation5 + $0xd4] sm:$0xf0]  ;;  %v1662_v51 = vld [vmem:[#allocation5 + $0xcc] sm:$0xf] }
  0x51   : > { %737 = vmatpush.bf16.msra.mxu3 %v1415_v10  ;;  %v1503_v49 = vor.u32 %v1698_v39, %v1500_v40  ;;  %v1696_v50 = vld [vmem:[#allocation5 + $0x1d4] sm:$0xf0]  ;;  %v1356_v52 = vld [vmem:[#allocation5 + $0xd8] sm:$0xf0]  ;;  %v2176_v53 = vpack.c.b16 %v367_v36, %v367_v36  ;;  %v1694_v54 = vld [vmem:[#allocation5 + $0x1cc] sm:$0xf]  ;;  %v2178_v56 = vpack.c.b16 %v368_v41, %v368_v41  ;;  %v1355_v57 = vor.u32 %v1664_v47, %v1354_v46 }
  0x52   : > { %699 = vmatpush.bf16.msra.mxu0 %v1267_v16  ;;  %v1484_v55 = vld [vmem:[#allocation5 + $0x1d8] sm:$0xf0]  ;;  %v1483_v58 = vor.u32 %v1696_v50, %v1482_v48  ;;  %v1359_v59 = vor.u32 %v1662_v51, %v1356_v52  ;;  %v1338_v60 = vld [vmem:[#allocation5 + $0xa8] sm:$0xf]  ;;  %v1660_v61 = vld [vmem:[#allocation5 + $0xb4] sm:$0xf0] }
  0x53   : > { %712 = vmatpush.bf16.msra.mxu1 %v1395_v20  ;;  %v1466_v62 = vld [vmem:[#allocation5 + $0x1a8] sm:$0xf]  ;;  %v1487_v63 = vor.u32 %v1694_v54, %v1484_v55  ;;  %v1692_v0 = vld [vmem:[#allocation5 + $0x1b4] sm:$0xf0]  ;;  %v1658_v1 = vld [vmem:[#allocation5 + $0xac] sm:$0xf]  ;;  %v1339_v5 = vor.u32 %v1660_v61, %v1338_v60 }
  0x54   : > { %725 = vmatpush.bf16.msra.mxu2 %v1271_v21  ;;  %v1340_v2 = vld [vmem:[#allocation5 + $0xb8] sm:$0xf0]  ;;  %v1690_v3 = vld [vmem:[#allocation5 + $0x1ac] sm:$0xf]  ;;  %v1467_v6 = vor.u32 %v1692_v0, %v1466_v62  ;;  %v1322_v8 = vld [vmem:[#allocation5 + $0x88] sm:$0xf] }
  0x55   : > { %738 = vmatpush.bf16.msra.mxu3 %v1399_v25  ;;  %v1468_v4 = vld [vmem:[#allocation5 + $0x1b8] sm:$0xf0]  ;;  %v1343_v7 = vor.u32 %v1658_v1, %v1340_v2  ;;  %v1656_v9 = vld [vmem:[#allocation5 + $0x94] sm:$0xf0]  ;;  %v1450_v10 = vld [vmem:[#allocation5 + $0x188] sm:$0xf] }
  0x56   : > { %700 = vmatpush.bf16.msra.mxu0 %v1251_v32  ;;  %v1471_v11 = vor.u32 %v1690_v3, %v1468_v4  ;;  %v1688_v12 = vld [vmem:[#allocation5 + $0x194] sm:$0xf0]  ;;  %v1654_v13 = vld [vmem:[#allocation5 + $0x8c] sm:$0xf]  ;;  %v1324_v14 = vld [vmem:[#allocation5 + $0x98] sm:$0xf0]  ;;  %v1323_v17 = vor.u32 %v1656_v9, %v1322_v8 }
  0x57   : > { %713 = vmatpush.bf16.msra.mxu1 %v1379_v37  ;;  %v1686_v15 = vld [vmem:[#allocation5 + $0x18c] sm:$0xf]  ;;  %v1452_v16 = vld [vmem:[#allocation5 + $0x198] sm:$0xf0]  ;;  %v1451_v18 = vor.u32 %v1688_v12, %v1450_v10  ;;  %v1327_v19 = vor.u32 %v1654_v13, %v1324_v14  ;;  %v1306_v20 = vld [vmem:[#allocation5 + $0x68] sm:$0xf] }
  0x58   : > { %726 = vmatpush.bf16.msra.mxu2 %v1255_v38  ;;  %v1652_v21 = vld [vmem:[#allocation5 + $0x74] sm:$0xf0]  ;;  %v1434_v22 = vld [vmem:[#allocation5 + $0x168] sm:$0xf]  ;;  %v1455_v23 = vor.u32 %v1686_v15, %v1452_v16  ;;  %v1650_v25 = vld [vmem:[#allocation5 + $0x6c] sm:$0xf] }
  0x59   : > { %739 = vmatpush.bf16.msra.mxu3 %v1383_v42  ;;  %701 = vmatmul.bf16.vlgmr.msra.gmra.mxu0 %v2176_v53  ;;  %v1684_v24 = vld [vmem:[#allocation5 + $0x174] sm:$0xf0]  ;;  %v1308_v26 = vld [vmem:[#allocation5 + $0x78] sm:$0xf0]  ;;  %v1682_v27 = vld [vmem:[#allocation5 + $0x16c] sm:$0xf]  ;;  %v1307_v29 = vor.u32 %v1652_v21, %v1306_v20 }
  0x5a   : > { %745 = vmatpush.bf16.msrb.mxu0 %v1371_v43  ;;  %714 = vmatmul.bf16.vlgmr.msra.gmra.mxu1 %v2178_v56  ;;  %v1436_v28 = vld [vmem:[#allocation5 + $0x178] sm:$0xf0]  ;;  %v1290_v30 = vld [vmem:[#allocation5 + $0x48] sm:$0xf]  ;;  %v1435_v31 = vor.u32 %v1684_v24, %v1434_v22  ;;  %v1311_v32 = vor.u32 %v1650_v25, %v1308_v26  ;;  %v1648_v33 = vld [vmem:[#allocation5 + $0x54] sm:$0xf0] }
  0x5b   : > { %758 = vmatpush.bf16.msrb.mxu1 %v1499_v44  ;;  %727 = vmatmul.bf16.vlgmr.msra.gmra.mxu2 %v2176_v53  ;;  %v1418_v34 = vld [vmem:[#allocation5 + $0x148] sm:$0xf]  ;;  %v1439_v35 = vor.u32 %v1682_v27, %v1436_v28  ;;  %v1680_v36 = vld [vmem:[#allocation5 + $0x154] sm:$0xf0]  ;;  %v1646_v37 = vld [vmem:[#allocation5 + $0x4c] sm:$0xf]  ;;  %v1291_v41 = vor.u32 %v1648_v33, %v1290_v30 }
  0x5c   : > { %771 = vmatpush.bf16.msrb.mxu2 %v1375_v45  ;;  %740 = vmatmul.bf16.vlgmr.msra.gmra.mxu3 %v2178_v56  ;;  %v1292_v38 = vld [vmem:[#allocation5 + $0x58] sm:$0xf0]  ;;  %v1678_v39 = vld [vmem:[#allocation5 + $0x14c] sm:$0xf]  ;;  %v1419_v42 = vor.u32 %v1680_v36, %v1418_v34  ;;  %v1274_v44 = vld [vmem:[#allocation5 + $0x28] sm:$0xf] }
  0x5d   : > { %784 = vmatpush.bf16.msrb.mxu3 %v1503_v49  ;;  %v1420_v40 = vld [vmem:[#allocation5 + $0x158] sm:$0xf0]  ;;  %v1295_v43 = vor.u32 %v1646_v37, %v1292_v38  ;;  %v1644_v45 = vld [vmem:[#allocation5 + $0x34] sm:$0xf0]  ;;  %v1402_v46 = vld [vmem:[#allocation5 + $0x128] sm:$0xf] }
  0x5e   : > { %746 = vmatpush.bf16.msrb.mxu0 %v1355_v57  ;;  %v1423_v47 = vor.u32 %v1678_v39, %v1420_v40  ;;  %v1676_v48 = vld [vmem:[#allocation5 + $0x134] sm:$0xf0]  ;;  %v1642_v49 = vld [vmem:[#allocation5 + $0x2c] sm:$0xf]  ;;  %v1276_v50 = vld [vmem:[#allocation5 + $0x38] sm:$0xf0]  ;;  %v1275_v54 = vor.u32 %v1644_v45, %v1274_v44 }
  0x5f   : > { %759 = vmatpush.bf16.msrb.mxu1 %v1483_v58  ;;  %v1674_v51 = vld [vmem:[#allocation5 + $0x12c] sm:$0xf]  ;;  %v1404_v52 = vld [vmem:[#allocation5 + $0x138] sm:$0xf0]  ;;  %v1403_v55 = vor.u32 %v1676_v48, %v1402_v46  ;;  %v1279_v57 = vor.u32 %v1642_v49, %v1276_v50  ;;  %v1258_v58 = vld [vmem:[#allocation5 + $0x8] sm:$0xf] }
  0x60   : > { %772 = vmatpush.bf16.msrb.mxu2 %v1359_v59  ;;  %v1640_v59 = vld [vmem:[#allocation5 + $0x14] sm:$0xf0]  ;;  %v1386_v60 = vld [vmem:[#allocation5 + $0x108] sm:$0xf]  ;;  %v1407_v61 = vor.u32 %v1674_v51, %v1404_v52  ;;  %v1260_v0 = vld [vmem:[#allocation5 + $0x18] sm:$0xf0] }
  0x61   : > { %785 = vmatpush.bf16.msrb.mxu3 %v1487_v63  ;;  %v1672_v62 = vld [vmem:[#allocation5 + $0x114] sm:$0xf0]  ;;  %v1638_v63 = vld [vmem:[#allocation5 + $0xc] sm:$0xf]  ;;  %v1388_v2 = vld [vmem:[#allocation5 + $0x118] sm:$0xf0]  ;;  %v1259_v3 = vor.u32 %v1640_v59, %v1258_v58 }
  0x62   : > { %747 = vmatpush.bf16.msrb.mxu0 %v1339_v5  ;;  %v1670_v1 = vld [vmem:[#allocation5 + $0x10c] sm:$0xf]  ;;  %v1387_v4 = vor.u32 %v1672_v62, %v1386_v60  ;;  %v1263_v5 = vor.u32 %v1638_v63, %v1260_v0  ;;  %v1716_v8 = vld [vmem:[#allocation8 + $0x78] sm:$0xff]  ;;  %v1707_v10 = vld [vmem:[#allocation8 + $0x30] sm:$0xff]  ;;  %s290_s27 = scalar_lea.vmem [#allocation10], %s1243_s13  ;;  %s1133_s10 = sshll.u32 %s1129_s22, 4  ;;  %s1134_s10 = int_to_ptr.hbm [resolvable:$true] %s1133_s10 }
  0x63   : > { %760 = vmatpush.bf16.msrb.mxu1 %v1467_v6  ;;  %v1391_v6 = vor.u32 %v1670_v1, %v1388_v2  ;;  %v1724_v9 = vld [vmem:[#allocation8 + $0xb8] sm:$0xff]  ;;  %v1706_v12 = vld [vmem:[#allocation8 + $0x28] sm:$0xff]  ;;  %v1705_v14 = vld [vmem:[#allocation8 + $0x20] sm:$0xff]  ;;  %s1131_s28 = sshll.u32 %s290_s27, 4  ;;  %s1119_s25 = scalar_lea.sflag [#allocation4], %s2155_s7  ;;  %s1132_s28 = int_to_ptr.vmem [resolvable:$true] %s1131_s28 }
  0x64   : > { %773 = vmatpush.bf16.msrb.mxu2 %v1343_v7  ;;  %v1708_v7 = vld [vmem:[#allocation8 + $0x38] sm:$0xff]  ;;  %v1714_v13 = vld [vmem:[#allocation8 + $0x68] sm:$0xff]  ;;  %v1713_v15 = vld [vmem:[#allocation8 + $0x60] sm:$0xff]  ;;  %s1949_s9 = sshra.s32 %s1134_s10, 4  ;;  %s1955_s13 = scalar_lea.hbm %s2231_s5, 16  ;;  %s1950_s9 = int_to_ptr.hbm [resolvable:$true] %s1949_s9 }
  0x65   : > { %786 = vmatpush.bf16.msrb.mxu3 %v1471_v11  ;;  %v1715_v11 = vld [vmem:[#allocation8 + $0x70] sm:$0xff]  ;;  %v1704_v16 = vld [vmem:[#allocation8 + $0x18] sm:$0xff]  ;;  %v1710_v20 = vld [vmem:[#allocation8 + $0x48] sm:$0xff]  ;;  %s1951_s11 = scalar_lea.hbm %s1950_s9, 8  ;;  %p1956_p12 = scmp.lt.s32.totalorder %s1950_s9, %s2231_s5 }
  0x66   : > { %748 = vmatpush.bf16.msrb.mxu0 %v1323_v17  ;;  %v1712_v17 = vld [vmem:[#allocation8 + $0x58] sm:$0xff]  ;;  %v1722_v22 = vld [vmem:[#allocation8 + $0xa8] sm:$0xff]  ;;  %v1709_v24 = vld [vmem:[#allocation8 + $0x40] sm:$0xff]  ;;  %p1952_p1 = scmp.ne.s32.totalorder %s1950_s9, %s1951_s11  ;;  %p1957_p8 = scmp.lt.s32.totalorder %s1955_s13, %s1951_s11 }
  0x67   : > { %761 = vmatpush.bf16.msrb.mxu1 %v1451_v18  ;;  %v1703_v18 = vld [vmem:[#allocation8 + $0x10] sm:$0xff]  ;;  %v1732_v21 = vld [vmem:[#allocation8 + $0xf8] sm:$0xff]  ;;  %v1721_v26 = vld [vmem:[#allocation8 + $0xa0] sm:$0xff] }
  0x68   : > { %774 = vmatpush.bf16.msrb.mxu2 %v1327_v19  ;;  %v1711_v19 = vld [vmem:[#allocation8 + $0x50] sm:$0xff]  ;;  %v1730_v27 = vld [vmem:[#allocation8 + $0xe8] sm:$0xff]  ;;  %v1720_v28 = vld [vmem:[#allocation8 + $0x98] sm:$0xff]  ;;  %p1953_p3 = pnand %p1952_p1, %p2124_p13  ;;  %p1958_p7 = por %p1957_p8, %p1956_p12 }
  0x69   : > { %787 = vmatpush.bf16.msrb.mxu3 %v1455_v23  ;;  %v1701_v23 = vld [vmem:[#allocation8] sm:$0xff]  ;;  %v1731_v25 = vld [vmem:[#allocation8 + $0xf0] sm:$0xff]  ;;  %v1718_v34 = vld [vmem:[#allocation8 + $0x88] sm:$0xff] }
  0x6a   : > { %749 = vmatpush.bf16.msrb.mxu0 %v1307_v29  ;;  %v1729_v29 = vld [vmem:[#allocation8 + $0xe0] sm:$0xff]  ;;  %v1719_v30 = vld [vmem:[#allocation8 + $0x90] sm:$0xff]  ;;  %p1954_p5 = pneg %p1953_p3 }
  0x6b   : > { %762 = vmatpush.bf16.msrb.mxu1 %v1435_v31  ;;  %v356_v31 = vld [vmem:[#allocation7] sm:$0xf]  ;;  %v1727_v36 = vld [vmem:[#allocation8 + $0xd0] sm:$0xff]  ;;  %v1717_v40 = vld [vmem:[#allocation8 + $0x80] sm:$0xff] }
  0x6c   : > { %775 = vmatpush.bf16.msrb.mxu2 %v1311_v32  ;;  %v1728_v32 = vld [vmem:[#allocation8 + $0xd8] sm:$0xff]  ;;  %v358_v33 = vperm.slane %v356_v31, 0  ;;  %v359_v39 = vperm.slane %v356_v31, 1  ;;  %v1725_v50 = vld [vmem:[#allocation8 + $0xc0] sm:$0xff]  ;;  %v360_v58 = vperm.slane %v356_v31, 2  ;;  %v361_v63 = vperm.slane %v356_v31, 3  ;;  %p1959_p9 = pnand %p1958_p7, %p1954_p5 }
  0x6d   : > { %788 = vmatpush.bf16.msrb.mxu3 %v1439_v35 }
  0x6e   : > { %750 = vmatpush.bf16.msrb.mxu0 %v1291_v41 }
  0x6f   : > { %763 = vmatpush.bf16.msrb.mxu1 %v1419_v42  ;;  %v1726_v42 = vld [vmem:[#allocation8 + $0xc8] sm:$0xff] }
  0x70   : > { %776 = vmatpush.bf16.msrb.mxu2 %v1295_v43 }
  0x71   : > { %789 = vmatpush.bf16.msrb.mxu3 %v1423_v47 }
  0x72   : > { %751 = vmatpush.bf16.msrb.mxu0 %v1275_v54 }
  0x73   : > { %764 = vmatpush.bf16.msrb.mxu1 %v1403_v55 }
  0x74   : > { %777 = vmatpush.bf16.msrb.mxu2 %v1279_v57 }
  0x75   : > { %790 = vmatpush.bf16.msrb.mxu3 %v1407_v61 }
  0x76   : > { %752 = vmatpush.bf16.msrb.mxu0 %v1259_v3 }
  0x77   : > { %765 = vmatpush.bf16.msrb.mxu1 %v1387_v4 }
  0x78   : > { %778 = vmatpush.bf16.msrb.mxu2 %v1263_v5 }
  0x79   : > { %791 = vmatpush.bf16.msrb.mxu3 %v1391_v6  ;;  %753 = vmatmul.bf16.vlgmr.msrb.gmra.mxu0 %v2176_v53 }
  0x7a   : > { %1065 = vmatpush.bf16.msra.mxu0 %v1708_v7  ;;  %766 = vmatmul.bf16.vlgmr.msrb.gmra.mxu1 %v2178_v56 }
  0x7b   : > { %1078 = vmatpush.bf16.msra.mxu1 %v1716_v8  ;;  %779 = vmatmul.bf16.vlgmr.msrb.gmra.mxu2 %v2176_v53  ;;  %v1723_v53 = vld [vmem:[#allocation8 + $0xb0] sm:$0xff] }
  0x7c   : > { %792 = vmatmul.bf16.vlgmr.msrb.gmra.mxu3 %v2178_v56  ;;  %1091 = vmatpush.bf16.msra.mxu2 %v1724_v9  ;;  %v1702_v56 = vld [vmem:[#allocation8 + $0x8] sm:$0xff] }
  0x7d   : > { %1104 = vmatpush.bf16.msra.mxu3 %v1732_v21 }
  0x7e   : > { %1066 = vmatpush.bf16.msra.mxu0 %v1707_v10 }
  0x7f   : > { %1079 = vmatpush.bf16.msra.mxu1 %v1715_v11 }
  0x80   : > { %1092 = vmatpush.bf16.msra.mxu2 %v1723_v53 }
  0x81   : > { %1105 = vmatpush.bf16.msra.mxu3 %v1731_v25 }
  0x82   : > { %1067 = vmatpush.bf16.msra.mxu0 %v1706_v12 }
  0x83   : > { %1080 = vmatpush.bf16.msra.mxu1 %v1714_v13 }
  0x84   : > { %1093 = vmatpush.bf16.msra.mxu2 %v1722_v22 }
  0x85   : > { %1106 = vmatpush.bf16.msra.mxu3 %v1730_v27 }
  0x86   : > { %1068 = vmatpush.bf16.msra.mxu0 %v1705_v14 }
  0x87   : > { %1081 = vmatpush.bf16.msra.mxu1 %v1713_v15 }
  0x88   : > { %1094 = vmatpush.bf16.msra.mxu2 %v1721_v26 }
  0x89   : > { %1107 = vmatpush.bf16.msra.mxu3 %v1729_v29 }
  0x8a   : > { %1069 = vmatpush.bf16.msra.mxu0 %v1704_v16  ;;  %v1814_v16 = vld [vmem:[%s2230_s4] ss:$0 sm:$0xff] }
  0x8b   : > { %1082 = vmatpush.bf16.msra.mxu1 %v1712_v17 }
  0x8c   : > { %1095 = vmatpush.bf16.msra.mxu2 %v1720_v28 }
  0x8d   : > { %1108 = vmatpush.bf16.msra.mxu3 %v1728_v32 }
  0x8e   : > { %1070 = vmatpush.bf16.msra.mxu0 %v1703_v18 }
  0x8f   : > { %1083 = vmatpush.bf16.msra.mxu1 %v1711_v19 }
  0x90   : > { %1096 = vmatpush.bf16.msra.mxu2 %v1719_v30 }
  0x91   : > { %1109 = vmatpush.bf16.msra.mxu3 %v1727_v36 }
  0x92   : > { %1071 = vmatpush.bf16.msra.mxu0 %v1702_v56 }
  0x93   : > { %1084 = vmatpush.bf16.msra.mxu1 %v1710_v20 }
  0x94   : > { %1097 = vmatpush.bf16.msra.mxu2 %v1718_v34 }
  0x95   : > { %1110 = vmatpush.bf16.msra.mxu3 %v1726_v42 }
  0x96   : > { %1072 = vmatpush.bf16.msra.mxu0 %v1701_v23 }
  0x97   : > { %1085 = vmatpush.bf16.msra.mxu1 %v1709_v24 }
  0x98   : > { %1098 = vmatpush.bf16.msra.mxu2 %v1717_v40 }
  0x99   : > { %1111 = vmatpush.bf16.msra.mxu3 %v1725_v50 }
  0xd6   : > { %v702_v35 = vpop.f32.mrf.mxu0 }
  0xd7   : > { %v703_v37 = vadd.f32 %v702_v35, %v358_v33  ;;  %v715_v38 = vpop.f32.mrf.mxu1 }
  0xd9   : > { %v716_v41 = vadd.f32 %v715_v38, %v703_v37 }
  0xdb   : > { %v797_v44 = vmax.f32 %v716_v41, 0.0 }
  0xdd   : > { %v801_v47 = vpack.c.bf16 %v797_v44, %v797_v44 }
  0xde   : > { %v728_v43 = vpop.f32.mrf.mxu2  ;;  %v704_v49 = vpop.f32.mrf.mxu0 }
  0xdf   : > { %v729_v45 = vadd.f32 %v728_v43, %v359_v39  ;;  %v741_v46 = vpop.f32.mrf.mxu3  ;;  %1073 = vmatmul.bf16.vlgmr.msra.gmra.mxu0 %v801_v47  ;;  %v717_v51 = vpop.f32.mrf.mxu1 }
  0xe1   : > { %v742_v48 = vadd.f32 %v741_v46, %v729_v45 }
  0xe3   : > { %v798_v52 = vmax.f32 %v742_v48, 0.0 }
  0xe5   : > { %v802_v54 = vpack.c.bf16 %v798_v52, %v798_v52 }
  0xe6   : > { %v730_v55 = vpop.f32.mrf.mxu2 }
  0xe7   : > { %1086 = vmatmul.bf16.vlgmr.msra.gmra.mxu1 %v802_v54  ;;  %v743_v57 = vpop.f32.mrf.mxu3 }
  0xf6   : > { %v754_v59 = vpop.f32.mrf.mxu0 }
  0xf7   : > { %v755_v60 = vadd.f32 %v754_v59, %v360_v58  ;;  %v767_v61 = vpop.f32.mrf.mxu1 }
  0xf9   : > { %v768_v62 = vadd.f32 %v767_v61, %v755_v60 }
  0xfb   : > { %v799_v0 = vmax.f32 %v768_v62, 0.0 }
  0xfd   : > { %v803_v1 = vpack.c.bf16 %v799_v0, %v799_v0 }
  0xfe   : > { %v780_v2 = vpop.f32.mrf.mxu2  ;;  %v756_v5 = vpop.f32.mrf.mxu0 }
  0xff   : > { %v781_v3 = vadd.f32 %v780_v2, %v361_v63  ;;  %v793_v4 = vpop.f32.mrf.mxu3  ;;  %v769_v6 = vpop.f32.mrf.mxu1  ;;  %1099 = vmatmul.bf16.vlgmr.msra.gmra.mxu2 %v803_v1 }
 0x101   : > { %v794_v7 = vadd.f32 %v793_v4, %v781_v3 }
 0x103   : > { %v800_v8 = vmax.f32 %v794_v7, 0.0 }
 0x105   : > { %v804_v9 = vpack.c.bf16 %v800_v8, %v800_v8 }
 0x106   : > { %v782_v10 = vpop.f32.mrf.mxu2 }
 0x107   : > { %v795_v11 = vpop.f32.mrf.mxu3  ;;  %1112 = vmatmul.bf16.vlgmr.msra.gmra.mxu3 %v804_v9 }
 0x15c   : > { %v1074_v12 = vpop.f32.mrf.mxu0 }
 0x15d   : > { %v1075_v17 = vadd.f32 %v1814_v16, %v1074_v12 }
 0x164   : > { %v1087_v13 = vpop.f32.mrf.mxu1  ;;  %v1076_v14 = vpop.f32.mrf.mxu0 }
 0x165   : > { %v1088_v19 = vadd.f32 %v1087_v13, %v1075_v17 }
 0x16c   : > { %v1089_v15 = vpop.f32.mrf.mxu1 }
 0x182   : > { %v1100_v18 = vpop.f32.mrf.mxu2 }
 0x183   : > { %v1101_v53 = vadd.f32 %v1100_v18, %v1088_v19 }
 0x18a   : > { %v1113_v56 = vpop.f32.mrf.mxu3  ;;  %v1102_v21 = vpop.f32.mrf.mxu2 }
 0x18b   : > { %v1114_v20 = vadd.f32 %v1113_v56, %v1101_v53 }
 0x18d   : > { %1117 = vst [vmem:[%s290_s27] sm:$0xff] %v1114_v20 }
 0x18e   : > { %1962 = shalt.err (!%p1959_p9)
}
 0x18f   : > { %1747 = dma.vmem_to_hbm [thread:$0]  (%p2124_p13), %s1132_s28, 128, %s1134_s10, %s1119_s25  }
 0x192   : > { %v1115_v22 = vpop.f32.mrf.mxu3 }
 0x193 PF: > { %s1145_s7 = sand.u32 1, %s1997_s18   ;;  %p2238_p10 = scmp.ge.s32.totalorder %s2009_s21, 2 }
 0x194   : > { %s1146_s30 = scalar_lea.sflag [#allocation4], %s1145_s7 }
 0x195   : > { %p1764_p11 = pnand %p2238_p10, %p2129_p4 }
 0x197   : > { %p1765_p0 = pneg %p1764_p11 }
 0x199   : > { %1992 = dma.done.wait (%p1765_p0), %s1146_s30, 128  }
 0x19a   : > { %1994 = vsyncadd (%p1765_p0), %s1146_s30, 4294967168  ;;  %p20_p2 = scmp.ge.s32.totalorder %s2104_s24, 4   ;;  %s2239_s18 = smov %s2001_s19 }
 0x19b   : > { %s2240_s19 = smov %s2005_s20  ;;  %s2241_s20 = smov %s2116_s29 }
 0x19c   : > { %s2242_s21 = smov %s2104_s24  ;;  %22 = sbr.rel (!%p20_p2) target bundleno = 7 (0x7), region = 97 }
 0x1a1   :  { %1152 = vsyncpa [#allocation3], 1 }
 0x1a2   :  { %1154 = vsyncpa [#allocation3 + $0x1], 1 }
 0x1a3   :  { %1155 = vsyncpa [#allocation6], 1 }
 0x1a4   :  { %1156 = vsyncpa [#allocation9], 1 }
 0x1a5   :  { %1157 = vsyncpa [#allocation4], 1 }
 0x1a6   :  { %1159 = vsyncpa [#allocation4 + $0x1], 1 }

</bundles_post_ra>
